<compile_context>
chip_gen: v6e
topology: v6e:2x2x1
jax: 0.10.0
libtpu: 0.0.40
codegen_flags: <defaults>
</compile_context>

<pallas_src>
import functools

import jax
import jax.numpy as jnp
from jax.experimental import pallas as pl
from jax.experimental.pallas import tpu as pltpu


# ---------------------------------------------------------------------------
# Pallas kernel: per node-tile i,
#   out_tile = tanh( d_i^-1/2 * (A_bin_tile @ Y) + b + x_tile )
# where Y = D^-1/2 * (X @ W) was precomputed (and bf16-cast) in the wrapper.
# ---------------------------------------------------------------------------
def _gresblock_kernel(y_ref, a_ref, dsq_ref, b_ref, x_ref, o_ref):
    # Single MXU matmul per node tile: (tile_n, Np) @ (Np, Hp), f32 accumulate.
    agg = jnp.dot(a_ref[...], y_ref[...], preferred_element_type=jnp.float32)
    # Row post-scale D^-1/2 (VPU), bias + exact f32 residual (VPU), tanh (EUP).
    o_ref[...] = jnp.tanh(
        dsq_ref[...] * agg + b_ref[...] + x_ref[...]
    ).astype(o_ref.dtype)


# ---------------------------------------------------------------------------
# Build the binary adjacency (with self loops) directly at the padded shape
# and in the matmul dtype, plus the f32 D^-1/2 vector.  Duplicate edges
# collapse (set, not add); the edge list is symmetrized explicitly.
# ---------------------------------------------------------------------------
def build_binary_adjacency(edge_index, num_nodes, padded_nodes=None,
                           dtype=jnp.float32):
    if padded_nodes is None:
        padded_nodes = num_nodes
    src, dst = edge_index[0], edge_index[1]
    a = jnp.zeros((padded_nodes, padded_nodes), dtype)
    a = a.at[dst, src].set(1.0)          # src -> dst aggregation
    a = a.at[src, dst].set(1.0)          # symmetrize (standard GCN assumption)
    diag = jnp.arange(num_nodes)
    a = a.at[diag, diag].set(1.0)        # self loops (exactly once)
    deg = a.sum(axis=1, dtype=jnp.float32)       # padded rows have deg 0
    d_inv_sqrt = jnp.where(deg > 0, jax.lax.rsqrt(deg), 0.0)
    return a, d_inv_sqrt


def gresblock_forward(x, edge_index, w, b, *, tile_n=128, lane=128,
                      matmul_dtype=jnp.bfloat16):
    """x: (N, F) node features, edge_index: (2, E) int, w: (F, H), b: (H,).
    Requires H == F (residual add).  tile_n=128 fills the v5e MXU; raise to
    256 on v6e/v7x when the VMEM budget allows."""
    N, F = x.shape
    F2, H = w.shape
    assert F2 == F
    assert H == F, "residual connection requires hidden_dim == in_dim"

    # Pad to MXU/lane-friendly sizes.
    Np = pl.cdiv(N, tile_n) * tile_n
    Fp = pl.cdiv(F, lane) * lane
    Hp = Fp  # H == F

    # Binary adjacency built directly at padded shape, in the matmul dtype.
    a_bin, d_inv_sqrt = build_binary_adjacency(edge_index, N, Np, matmul_dtype)

    # Precompute XW once (tiny N*F*H matmul), pre-scale rows by D^-1/2 (f32),
    # then cast to bf16.  This is the constant resident operand of the kernel.
    xw = x.astype(jnp.float32) @ w.astype(jnp.float32)            # (N, H)
    xw_p = jnp.pad(xw, ((0, Np - N), (0, Hp - H)))                # (Np, Hp) f32
    y = (d_inv_sqrt[:, None] * xw_p).astype(matmul_dtype)         # resident

    x_p = jnp.pad(x.astype(jnp.float32), ((0, Np - N), (0, Fp - F)))
    b2d = jnp.pad(b.astype(jnp.float32), (0, Hp - H)).reshape(1, Hp)
    dsq = d_inv_sqrt.astype(jnp.float32).reshape(Np, 1)

    # Explicit VMEM budget: single-buffered residents + double-buffered streams.
    bpe = jnp.dtype(matmul_dtype).itemsize
    needed = (
        Np * Hp * bpe                 # Y resident (Buffered(1))
        + 2 * tile_n * Np * bpe       # A row tile (double buffered)
        + 2 * tile_n * Fp * 4         # residual tile
        + 2 * tile_n * Hp * 4         # output tile
        + 2 * tile_n * 128 * 4        # D^-1/2 tile (lane-padded)
        + 8 * Hp * 4                  # bias (sublane-padded, Buffered(1))
    )
    vmem_limit = int(min(max(needed + (8 << 20), 16 << 20), 100 << 20))

    grid = (Np // tile_n,)
    out = pl.pallas_call(
        _gresblock_kernel,
        out_shape=jax.ShapeDtypeStruct((Np, Hp), jnp.float32),
        grid_spec=pltpu.PrefetchScalarGridSpec(
            num_scalar_prefetch=0,
            grid=grid,
            in_specs=[
                # Pre-scaled XW: resident, single-buffered (never changes).
                pl.BlockSpec((Np, Hp), lambda i: (0, 0),
                             pipeline_mode=pl.Buffered(1)),
                # Binary A row tile: streamed per grid step.
                pl.BlockSpec((tile_n, Np), lambda i: (i, 0)),
                # D^-1/2 for this row tile (f32 post-scale).
                pl.BlockSpec((tile_n, 1), lambda i: (i, 0)),
                # Bias: resident, single-buffered.
                pl.BlockSpec((1, Hp), lambda i: (0, 0),
                             pipeline_mode=pl.Buffered(1)),
                # Exact f32 residual tile.
                pl.BlockSpec((tile_n, Fp), lambda i: (i, 0)),
            ],
            out_specs=pl.BlockSpec((tile_n, Hp), lambda i: (i, 0)),
        ),
        compiler_params=pltpu.CompilerParams(
            dimension_semantics=("parallel",),   # shard node tiles across cores
            vmem_limit_bytes=vmem_limit,
        ),
    )(y, a_bin, dsq, b2d, x_p)
    return out[:N, :H]


# ---------------------------------------------------------------------------
# References.
# ---------------------------------------------------------------------------
def gresblock_reference_f32(x, edge_index, w, b):
    """Pure-f32 module semantics: tanh(A_hat @ (x @ w) + b + x)."""
    N = x.shape[0]
    a_bin, d_inv_sqrt = build_binary_adjacency(edge_index, N, N, jnp.float32)
    a_hat = d_inv_sqrt[:, None] * a_bin * d_inv_sqrt[None, :]
    return jnp.tanh(a_hat @ (x @ w) + b[None, :] + x)


def gresblock_reference_matched(x, edge_index, w, b):
    """Same factored math / bf16 casts as the kernel (tight structural check)."""
    N = x.shape[0]
    a_bin, d_inv_sqrt = build_binary_adjacency(edge_index, N, N, jnp.float32)
    y = (d_inv_sqrt[:, None] * (x @ w)).astype(jnp.bfloat16)
    agg = jnp.dot(a_bin.astype(jnp.bfloat16), y,
                  preferred_element_type=jnp.float32)
    return jnp.tanh(d_inv_sqrt[:, None] * agg + b[None, :] + x)


# ---------------------------------------------------------------------------
if __name__ == "__main__":
    # Graph node features (node-major), in_dim == hidden_dim (residual add).
    N = 256         # number of graph nodes (-> 2 node tiles of 128)
    IN_DIM = 32     # in_dim
    HIDDEN = 32     # hidden_dim (must equal in_dim for the residual)

    key = jax.random.PRNGKey(0)
    k_x, k_w1, k_b1, k_w2 = jax.random.split(key, 4)

    x = jax.random.normal(k_x, (N, IN_DIM), jnp.float32)

    # Deterministic ring graph edge_index (2, E): each node <-> next node.
    src = jnp.arange(N, dtype=jnp.int32)
    dst = (src + 1) % N
    edge_index = jnp.stack(
        [jnp.concatenate([src, dst]), jnp.concatenate([dst, src])], axis=0
    )

    # GConv parameters (weights_init='normal').
    w1 = 0.1 * jax.random.normal(k_w1, (IN_DIM, HIDDEN), jnp.float32)
    b1 = 0.1 * jax.random.normal(k_b1, (HIDDEN,), jnp.float32)
    # conv2 parameters exist in __init__ but are unused in forward():
    _w2_unused = 0.1 * jax.random.normal(k_w2, (HIDDEN, IN_DIM), jnp.float32)

    run = jax.jit(functools.partial(gresblock_forward, tile_n=128))
    out = jax.block_until_ready(run(x, edge_index, w1, b1))
    assert out.shape == (N, HIDDEN)

    # Tight check vs a reference doing the identical bf16 casts / factoring.
    ref_m = gresblock_reference_matched(x, edge_index, w1, b1)
    assert jnp.allclose(out, ref_m, atol=1e-3, rtol=1e-3), \
        "mismatch vs bf16-matched reference"
    # Loose check vs the pure-f32 module semantics (bf16 matmul rounding).
    ref_f = gresblock_reference_f32(x, edge_index, w1, b1)
    assert jnp.allclose(out, ref_f, atol=5e-2), "mismatch vs f32 reference"

    print("KERNEL_OK")
</pallas_src>

<mosaic_0001>
module attributes {stable_mosaic.version = 11 : i64} {
  func.func @_gresblock_kernel(%arg0: i32, %arg1: memref<256x128xbf16, #tpu.memory_space<vmem>>, %arg2: memref<128x256xbf16, #tpu.memory_space<vmem>>, %arg3: memref<128x1xf32, #tpu.memory_space<vmem>>, %arg4: memref<1x128xf32, #tpu.memory_space<vmem>>, %arg5: memref<128x128xf32, #tpu.memory_space<vmem>>, %arg6: memref<128x128xf32, #tpu.memory_space<vmem>>) attributes {dimension_semantics = [#tpu.dimension_semantics<parallel>], iteration_bounds = array<i64: 2>, scalar_prefetch = 0 : i64, scratch_operands = 0 : i64, tpu.core_type = #tpu.core_type<tc>, window_params = [{pipeline_mode = #tpu.pipeline_mode<synchronous>, transform_indices = @transform_0, window_bounds = array<i64: 256, 128>}, {transform_indices = @transform_1, window_bounds = array<i64: 128, 256>}, {transform_indices = @transform_2, window_bounds = array<i64: 128, 1>}, {pipeline_mode = #tpu.pipeline_mode<synchronous>, transform_indices = @transform_3, window_bounds = array<i64: 1, 128>}, {transform_indices = @transform_4, window_bounds = array<i64: 128, 128>}, {transform_indices = @transform_5, window_bounds = array<i64: 128, 128>}]} {
    %c0 = arith.constant 0 : index
    %c0_0 = arith.constant 0 : index
    %0 = vector.load %arg2[%c0, %c0_0] : memref<128x256xbf16, #tpu.memory_space<vmem>>, vector<128x256xbf16>
    %c0_1 = arith.constant 0 : index
    %c0_2 = arith.constant 0 : index
    %1 = vector.load %arg1[%c0_1, %c0_2] : memref<256x128xbf16, #tpu.memory_space<vmem>>, vector<256x128xbf16>
    %cst = arith.constant dense<0.000000e+00> : vector<128x128xf32>
    %2 = tpu.matmul %0, %1, %cst {dimension_numbers = #tpu.dot_dimension_numbers<[1], [0], [0], [1], [0, 0, 1, 1], [], []>} : vector<128x256xbf16>, vector<256x128xbf16>, vector<128x128xf32> -> vector<128x128xf32>
    %c0_3 = arith.constant 0 : index
    %c0_4 = arith.constant 0 : index
    %3 = vector.load %arg3[%c0_3, %c0_4] : memref<128x1xf32, #tpu.memory_space<vmem>>, vector<128x1xf32>
    %4 = vector.broadcast %3 : vector<128x1xf32> to vector<128x128xf32>
    %5 = arith.mulf %4, %2 : vector<128x128xf32>
    %c0_5 = arith.constant 0 : index
    %c0_6 = arith.constant 0 : index
    %6 = vector.load %arg4[%c0_5, %c0_6] : memref<1x128xf32, #tpu.memory_space<vmem>>, vector<1x128xf32>
    %7 = vector.broadcast %6 : vector<1x128xf32> to vector<128x128xf32>
    %8 = arith.addf %5, %7 : vector<128x128xf32>
    %c0_7 = arith.constant 0 : index
    %c0_8 = arith.constant 0 : index
    %9 = vector.load %arg5[%c0_7, %c0_8] : memref<128x128xf32, #tpu.memory_space<vmem>>, vector<128x128xf32>
    %10 = arith.addf %8, %9 : vector<128x128xf32>
    %11 = math.tanh %10 : vector<128x128xf32>
    %c0_9 = arith.constant 0 : index
    %c0_10 = arith.constant 0 : index
    %12 = vector.load %arg6[%c0_9, %c0_10] : memref<128x128xf32, #tpu.memory_space<vmem>>, vector<128x128xf32>
    tpu.vector_store %arg6[%c0_9, %c0_10], %11 {strides = array<i32>} : memref<128x128xf32, #tpu.memory_space<vmem>>, vector<128x128xf32>,
    return
  }
  func.func @transform_0(%arg0: i32) -> (i32, i32) {
    %c0_i32 = arith.constant 0 : i32
    %c0_i32_0 = arith.constant 0 : i32
    %c0_i32_1 = arith.constant 0 : i32
    return %c0_i32, %c0_i32_0 : i32, i32
  }
  func.func @transform_1(%arg0: i32) -> (i32, i32) {
    %c0_i32 = arith.constant 0 : i32
    %c0_i32_0 = arith.constant 0 : i32
    return %arg0, %c0_i32 : i32, i32
  }
  func.func @transform_2(%arg0: i32) -> (i32, i32) {
    %c0_i32 = arith.constant 0 : i32
    %c0_i32_0 = arith.constant 0 : i32
    return %arg0, %c0_i32 : i32, i32
  }
  func.func @transform_3(%arg0: i32) -> (i32, i32) {
    %c0_i32 = arith.constant 0 : i32
    %c0_i32_0 = arith.constant 0 : i32
    %c0_i32_1 = arith.constant 0 : i32
    return %c0_i32, %c0_i32_0 : i32, i32
  }
  func.func @transform_4(%arg0: i32) -> (i32, i32) {
    %c0_i32 = arith.constant 0 : i32
    %c0_i32_0 = arith.constant 0 : i32
    return %arg0, %c0_i32 : i32, i32
  }
  func.func @transform_5(%arg0: i32) -> (i32, i32) {
    %c0_i32 = arith.constant 0 : i32
    %c0_i32_0 = arith.constant 0 : i32
    return %arg0, %c0_i32 : i32, i32
  }
}

</mosaic_0001>

<bundles_post_ra>
// kernel: gresblock_forward.1
= control target key start
LH: loop header
LB: loop body
LE: loop exit
PB: predicated region body
PF: predicated region fallthrough
CT: control target
= control target key end

     0   :  { %s1128_s18 = smov 0   ;;  %s1313_s0 = inlined_call_operand.vmem [shape: bf16[256,128], index: 0, kind: input, shape index: {}]   ;;  %s1314_s1 = inlined_call_operand.vmem [shape: bf16[256,256], index: 1, kind: input, shape index: {}]   ;;  %s1315_s2 = inlined_call_operand.vmem [shape: f32[256,1], index: 2, kind: input, shape index: {}]   ;;  %s1316_s3 = inlined_call_operand.vmem [shape: f32[1,128], index: 3, kind: input, shape index: {}]   ;;  %s1317_s4 = inlined_call_operand.vmem [shape: f32[256,128], index: 4, kind: input, shape index: {}]   ;;  %s1318_s5 = inlined_call_operand.vmem [shape: f32[256,128], index: 5, kind: output, shape index: {}]  }
   0x1 LB: > { %s876_s19 = sadd.s32 4294967295, %s1095_s18   ;;  %p880_p0 = scmp.ge.s32.totalorder %s1095_s18, 1  ;;  %s1095_s18 = sphi %s1128_s18, %s15_s18  }
   0x2   : > { %p211_p1 = scmp.lt.s32.totalorder %s1095_s18, 3 }
   0x4   : > { %p212_p2 = pnand %p880_p0, %p211_p1 }
   0x5   : > { %s881_s22 = sshll.u32 (!%p212_p2), %s876_s19, 4 }
   0x6   : > { %215 = sbr.rel (%p212_p2) target bundleno = 291 (0x123), region = 40  ;;  %p251_p3 = scmp.lt.s32.totalorder (!%p212_p2), %s881_s22, 31 }
   0xb   : > { %v1017_v0 = vld [vmem:[%s1313_s0 + $0x78] sm:$0xff]   ;;  %v1019_v2 = vld [vmem:[%s1313_s0 + $0x70] sm:$0xff]   ;;  %v1021_v4 = vld [vmem:[%s1313_s0 + $0x68] sm:$0xff]   ;;  %v1097_v5 = vmov 0   ;;  %s1320_s22 = smov (!%p251_p3, %s881_s22), 31 }
   0xc   : > { %v1018_v1 = vld [vmem:[%s1313_s0 + $0x38] sm:$0xff]   ;;  %926 = vmatprep.subr.bf16.mxu0 %v1017_v0  ;;  %990 = vmatprep.subr.bf16.mxu1 %v1017_v0  ;;  %v1020_v3 = vld [vmem:[%s1313_s0 + $0x30] sm:$0xff]   ;;  %v1022_v6 = vld [vmem:[%s1313_s0 + $0x28] sm:$0xff]   ;;  %s1160_s12 = sshll.u32 %s1320_s22, 3 }
   0xd   : > { %927 = vmatpush3.bf16.msra.mxu0 %v1018_v1  ;;  %998 = vmatpush3.bf16.msra.mxu1 %v1018_v1  ;;  %v1023_v7 = vld [vmem:[%s1313_s0 + $0x60] sm:$0xff]   ;;  %v1025_v9 = vld [vmem:[%s1313_s0 + $0x58] sm:$0xff]   ;;  %s1169_s17 = scalar_lea.vmem %s1314_s1, %s1160_s12  ;;  %v1027_v11 = vld [vmem:[%s1313_s0 + $0x50] sm:$0xff]   ;;  %s1192_s6 = scalar_lea.vmem %s1315_s2, %s1160_s12 }
   0xe   : > { %928 = vmatprep.subr.bf16.mxu0 %v1019_v2  ;;  %991 = vmatprep.subr.bf16.mxu1 %v1019_v2  ;;  %v1024_v8 = vld [vmem:[%s1313_s0 + $0x20] sm:$0xff]   ;;  %v1026_v10 = vld [vmem:[%s1313_s0 + $0x18] sm:$0xff]   ;;  %v1028_v14 = vld [vmem:[%s1313_s0 + $0x10] sm:$0xff]   ;;  %s1244_s14 = scalar_lea.vmem %s1317_s4, %s1160_s12  ;;  %s1273_s20 = scalar_lea.vmem %s1318_s5, %s1160_s12 }
   0xf   : > { %1016 = vset.pattern.permute.xlu1 %v1097_v5  ;;  %1015 = vset.pattern.permute.xlu0 %v1097_v5  ;;  %v1035_v12 = vld [vmem:[%s1169_s17 + $0x4] ss:$8 sps:$4 sm:$0xff]   ;;  %v599_v18 = vld [vmem:[%s1192_s6 + $0x10] sm:$0xff]  ;;  %v1033_v21 = vld [vmem:[%s1169_s17] ss:$8 sps:$4 sm:$0xff]  }
  0x10   : > { %v1038_v13 = vld [vmem:[%s1169_s17 + $0x44] ss:$8 sps:$4 sm:$0xff]   ;;  %532 = vmatprep.mubr.bf16.mxu0 %v1035_v12  ;;  %625 = vperm.xlu1 %1016, %v599_v18   ;;  %v1036_v22 = vld [vmem:[%s1169_s17 + $0x40] ss:$8 sps:$4 sm:$0xff]   ;;  %v600_v23 = vld [vmem:[%s1192_s6 + $0x18] sm:$0xff] }
  0x11   : > { %929 = vmatpush3.bf16.msra.mxu0 %v1020_v3  ;;  %999 = vmatpush3.bf16.msra.mxu1 %v1020_v3  ;;  %v1029_v15 = vld [vmem:[%s1313_s0 + $0x48] sm:$0xff]   ;;  %v1031_v17 = vld [vmem:[%s1313_s0 + $0x40] sm:$0xff]   ;;  %v1039_v25 = vld [vmem:[%s1169_s17 + $0x14] ss:$8 sps:$4 sm:$0xff]  }
  0x12   : > { %930 = vmatprep.subr.bf16.mxu0 %v1021_v4  ;;  %992 = vmatprep.subr.bf16.mxu1 %v1021_v4  ;;  %v1030_v16 = vld [vmem:[%s1313_s0 + $0x8] sm:$0xff]   ;;  %v1032_v19 = vld [vmem:[%s1313_s0] sm:$0xff]   ;;  %v1041_v26 = vld [vmem:[%s1169_s17 + $0x54] ss:$8 sps:$4 sm:$0xff]  }
  0x13   : > { %564 = vmatprep.mubr.bf16.mxu1 %v1038_v13  ;;  %v597_v20 = vld [vmem:[%s1192_s6] sm:$0xff]  ;;  %v598_v24 = vld [vmem:[%s1192_s6 + $0x8] sm:$0xff]  ;;  %v1043_v29 = vld [vmem:[%s1169_s17 + $0x10] ss:$8 sps:$4 sm:$0xff]  }
  0x14   : > { %615 = vperm.xlu0 %1015, %v597_v20   ;;  %630 = vperm.xlu1 %1016, %v600_v23   ;;  %v602_v27 = vld [vmem:[%s1192_s6 + $0x28] sm:$0xff]  ;;  %v601_v28 = vld [vmem:[%s1192_s6 + $0x20] sm:$0xff]  ;;  %v1044_v30 = vld [vmem:[%s1169_s17 + $0x50] ss:$8 sps:$4 sm:$0xff]  }
  0x15   : > { %931 = vmatpush3.bf16.msra.mxu0 %v1022_v6  ;;  %1000 = vmatpush3.bf16.msra.mxu1 %v1022_v6  ;;  %v604_v31 = vld [vmem:[%s1192_s6 + $0x38] sm:$0xff]  ;;  %v603_v32 = vld [vmem:[%s1192_s6 + $0x30] sm:$0xff]  ;;  %v1045_v33 = vld [vmem:[%s1169_s17 + $0x24] ss:$8 sps:$4 sm:$0xff]  }
  0x16   : > { %932 = vmatprep.subr.bf16.mxu0 %v1023_v7  ;;  %993 = vmatprep.subr.bf16.mxu1 %v1023_v7  ;;  %v1047_v34 = vld [vmem:[%s1169_s17 + $0x64] ss:$8 sps:$4 sm:$0xff]   ;;  %v1049_v37 = vld [vmem:[%s1169_s17 + $0x20] ss:$8 sps:$4 sm:$0xff]   ;;  %v608_v39 = vld [vmem:[%s1192_s6 + $0x58] sm:$0xff] }
  0x17   : > { %v606_v35 = vld [vmem:[%s1192_s6 + $0x48] sm:$0xff]  ;;  %v605_v36 = vld [vmem:[%s1192_s6 + $0x40] sm:$0xff]  ;;  %v607_v40 = vld [vmem:[%s1192_s6 + $0x50] sm:$0xff] }
  0x18   : > { %620 = vperm.xlu0 %1015, %v598_v24   ;;  %640 = vperm.xlu1 %1016, %v602_v27   ;;  %v1050_v38 = vld [vmem:[%s1169_s17 + $0x60] ss:$8 sps:$4 sm:$0xff]   ;;  %v1051_v41 = vld [vmem:[%s1169_s17 + $0x34] ss:$8 sps:$4 sm:$0xff]   ;;  %v1055_v45 = vld [vmem:[%s1169_s17 + $0x30] ss:$8 sps:$4 sm:$0xff]  }
  0x19   : > { %933 = vmatpush3.bf16.msra.mxu0 %v1024_v8  ;;  %1001 = vmatpush3.bf16.msra.mxu1 %v1024_v8  ;;  %v1053_v42 = vld [vmem:[%s1169_s17 + $0x74] ss:$8 sps:$4 sm:$0xff]   ;;  %v610_v43 = vld [vmem:[%s1192_s6 + $0x68] sm:$0xff]  ;;  %v609_v44 = vld [vmem:[%s1192_s6 + $0x60] sm:$0xff] }
  0x1a   : > { %934 = vmatprep.subr.bf16.mxu0 %v1025_v9  ;;  %994 = vmatprep.subr.bf16.mxu1 %v1025_v9  ;;  %v1056_v46 = vld [vmem:[%s1169_s17 + $0x70] ss:$8 sps:$4 sm:$0xff]   ;;  %v1249_v0 = vld [vmem:[%s1316_s3] ss:$0 sm:$0xff]  ;;  %v733_v20 = vld [vmem:[%s1244_s14 + $0x8] sm:$0xff] }
  0x1b   : > { %v612_v47 = vld [vmem:[%s1192_s6 + $0x78] sm:$0xff]  ;;  %v611_v48 = vld [vmem:[%s1192_s6 + $0x70] sm:$0xff]  ;;  %v732_v5 = vld [vmem:[%s1244_s14] sm:$0xff] }
  0x1c   : > { %635 = vperm.xlu0 %1015, %v601_v28   ;;  %650 = vperm.xlu1 %1016, %v604_v31   ;;  %v740_v6 = vld [vmem:[%s1244_s14 + $0x40] sm:$0xff] }
  0x1d   : > { %935 = vmatpush3.bf16.msra.mxu0 %v1026_v10  ;;  %1002 = vmatpush3.bf16.msra.mxu1 %v1026_v10 }
  0x1e   : > { %936 = vmatprep.subr.bf16.mxu0 %v1027_v11  ;;  %995 = vmatprep.subr.bf16.mxu1 %v1027_v11 }
  0x20   : > { %645 = vperm.xlu0 %1015, %v603_v32   ;;  %660 = vperm.xlu1 %1016, %v606_v35  }
  0x21   : > { %937 = vmatpush3.bf16.msra.mxu0 %v1028_v14  ;;  %1003 = vmatpush3.bf16.msra.mxu1 %v1028_v14 }
  0x22   : > { %938 = vmatprep.subr.bf16.mxu0 %v1029_v15  ;;  %996 = vmatprep.subr.bf16.mxu1 %v1029_v15 }
  0x24   : > { %655 = vperm.xlu0 %1015, %v605_v36   ;;  %670 = vperm.xlu1 %1016, %v608_v39  }
  0x25   : > { %939 = vmatpush3.bf16.msra.mxu0 %v1030_v16  ;;  %1004 = vmatpush3.bf16.msra.mxu1 %v1030_v16 }
  0x26   : > { %940 = vmatprep.subr.bf16.mxu0 %v1031_v17  ;;  %997 = vmatprep.subr.bf16.mxu1 %v1031_v17 }
  0x28   : > { %665 = vperm.xlu0 %1015, %v607_v40   ;;  %680 = vperm.xlu1 %1016, %v610_v43   ;;  %v742_v40 = vld [vmem:[%s1244_s14 + $0x50] sm:$0xff] }
  0x29   : > { %941 = vmatpush3.bf16.msra.mxu0 %v1032_v19  ;;  %1005 = vmatpush3.bf16.msra.mxu1 %v1032_v19 }
  0x2c   : > { %533 = vmatmul.mubr.bf16.vlgmr.msra.gmra.mxu0 %v1033_v21  ;;  %565 = vmatmul.mubr.bf16.vlgmr.msra.gmra.mxu1 %v1036_v22  ;;  %v741_v21 = vld [vmem:[%s1244_s14 + $0x48] sm:$0xff] }
  0x2d   : > { %540 = vmatprep.mubr.bf16.mxu0 %v1039_v25  ;;  %572 = vmatprep.mubr.bf16.mxu1 %v1041_v26 }
  0x2e   : > { %675 = vperm.xlu0 %1015, %v609_v44   ;;  %690 = vperm.xlu1 %1016, %v612_v47  }
  0x32   : > { %685 = vperm.xlu0 %1015, %v611_v48  }
  0x34   : > { %541 = vmatmul.mubr.bf16.gmra.mxu0 %v1043_v29  ;;  %573 = vmatmul.mubr.bf16.gmra.mxu1 %v1044_v30 }
  0x35   : > { %548 = vmatprep.mubr.bf16.mxu0 %v1045_v33  ;;  %580 = vmatprep.mubr.bf16.mxu1 %v1047_v34  ;;  %v734_v34 = vld [vmem:[%s1244_s14 + $0x10] sm:$0xff] }
  0x3c   : > { %549 = vmatmul.mubr.bf16.gmra.mxu0 %v1049_v37  ;;  %581 = vmatmul.mubr.bf16.gmra.mxu1 %v1050_v38 }
  0x3d   : > { %556 = vmatprep.mubr.bf16.mxu0 %v1051_v41  ;;  %588 = vmatprep.mubr.bf16.mxu1 %v1053_v42 }
  0x44   : > { %557 = vmatmul.mubr.bf16.gmra.mxu0 %v1055_v45  ;;  %589 = vmatmul.mubr.bf16.gmra.mxu1 %v1056_v46 }
  0x8b   : > { %v626_v50 = vpop.permute.xlu1 %625 }
  0x8f   : > { %v616_v49 = vpop.permute.xlu0 %615  ;;  %v1230_v52 = vpop.permute.xlu1 %630 }
  0x93   : > { %v621_v51 = vpop.permute.xlu0 %620  ;;  %v1234_v54 = vpop.permute.xlu1 %640 }
  0x97   : > { %v1232_v53 = vpop.permute.xlu0 %635  ;;  %v1238_v58 = vpop.permute.xlu1 %650 }
  0x9b   : > { %v1236_v55 = vpop.permute.xlu0 %645  ;;  %v661_v9 = vpop.permute.xlu1 %660 }
  0x9f   : > { %v656_v61 = vpop.permute.xlu0 %655  ;;  %v671_v38 = vpop.permute.xlu1 %670 }
  0xa3   : > { %v666_v30 = vpop.permute.xlu0 %665 }
  0xec   : > { %v942_v56 = vpop.f32.mrf.mxu0  ;;  %v966_v57 = vpop.f32.mrf.mxu1 }
  0xee   : > { %v943_v59 = vpop.f32.mrf.mxu0  ;;  %v967_v60 = vpop.f32.mrf.mxu1 }
  0xef   : > { %v944_v62 = vadd.f32 %v943_v59, %v942_v56  ;;  %v968_v63 = vadd.f32 %v967_v60, %v966_v57 }
  0xf0   : > { %v945_v1 = vpop.f32.mrf.mxu0  ;;  %v969_v2 = vpop.f32.mrf.mxu1 }
  0xf1   : > { %v693_v3 = vmul.f32 %v944_v62, %v616_v49  ;;  %v701_v4 = vmul.f32 %v968_v63, %v656_v61 }
  0xf2   : > { %v946_v7 = vpop.f32.mrf.mxu0  ;;  %v970_v8 = vpop.f32.mrf.mxu1 }
  0xf3   : > { %v716_v10 = vadd.f32 %v1249_v0, %v693_v3  ;;  %v724_v11 = vadd.f32 %v1249_v0, %v701_v4  ;;  %v947_v12 = vadd.f32 %v946_v7, %v945_v1  ;;  %v971_v13 = vadd.f32 %v970_v8, %v969_v2 }
  0xf4   : > { %v948_v14 = vpop.f32.mrf.mxu0  ;;  %v972_v15 = vpop.f32.mrf.mxu1 }
  0xf5   : > { %v748_v16 = vadd.f32 %v732_v5, %v716_v10  ;;  %v756_v17 = vadd.f32 %v740_v6, %v724_v11  ;;  %v694_v18 = vmul.f32 %v947_v12, %v621_v51  ;;  %v702_v19 = vmul.f32 %v971_v13, %v661_v9  ;;  %v743_v51 = vld [vmem:[%s1244_s14 + $0x58] sm:$0xff]  ;;  %v736_v5 = vld [vmem:[%s1244_s14 + $0x20] sm:$0xff]  ;;  %v681_v9 = vpop.permute.xlu1 %680 }
  0xf6   : > { %v949_v22 = vpop.f32.mrf.mxu0  ;;  %v973_v23 = vpop.f32.mrf.mxu1  ;;  %v744_v11 = vld [vmem:[%s1244_s14 + $0x60] sm:$0xff] }
  0xf7   : > { %1057 = vtanh.f32 %v748_v16  ;;  %v717_v24 = vadd.f32 %v1249_v0, %v694_v18  ;;  %v725_v25 = vadd.f32 %v1249_v0, %v702_v19  ;;  %v950_v26 = vadd.f32 %v949_v22, %v948_v14  ;;  %v737_v22 = vld [vmem:[%s1244_s14 + $0x28] sm:$0xff] }
  0xf8   : > { %1059 = vtanh.f32 %v756_v17  ;;  %v974_v27 = vadd.f32 %v973_v23, %v972_v15  ;;  %v951_v28 = vpop.f32.mrf.mxu0  ;;  %v975_v29 = vpop.f32.mrf.mxu1  ;;  %v745_v23 = vld [vmem:[%s1244_s14 + $0x68] sm:$0xff] }
  0xf9   : > { %v749_v31 = vadd.f32 %v733_v20, %v717_v24  ;;  %v757_v32 = vadd.f32 %v741_v21, %v725_v25  ;;  %v695_v33 = vmul.f32 %v950_v26, %v626_v50  ;;  %v735_v50 = vld [vmem:[%s1244_s14 + $0x18] sm:$0xff] }
  0xfa   : > { %v703_v35 = vmul.f32 %v974_v27, %v666_v30  ;;  %v952_v36 = vpop.f32.mrf.mxu0  ;;  %v976_v37 = vpop.f32.mrf.mxu1 }
  0xfb   : > { %1061 = vtanh.f32 %v749_v31  ;;  %v718_v39 = vadd.f32 %v1249_v0, %v695_v33  ;;  %v953_v41 = vadd.f32 %v952_v36, %v951_v28  ;;  %v977_v42 = vadd.f32 %v976_v37, %v975_v29  ;;  %v738_v37 = vld [vmem:[%s1244_s14 + $0x30] sm:$0xff] }
  0xfc   : > { %1063 = vtanh.f32 %v757_v32  ;;  %v726_v43 = vadd.f32 %v1249_v0, %v703_v35  ;;  %v954_v44 = vpop.f32.mrf.mxu0  ;;  %v978_v45 = vpop.f32.mrf.mxu1 }
  0xfd   : > { %v750_v46 = vadd.f32 %v734_v34, %v718_v39  ;;  %v696_v47 = vmul.f32 %v953_v41, %v1230_v52  ;;  %v704_v48 = vmul.f32 %v977_v42, %v671_v38  ;;  %v676_v52 = vpop.permute.xlu0 %675  ;;  %v746_v42 = vld [vmem:[%s1244_s14 + $0x70] sm:$0xff] }
  0xfe   : > { %v758_v49 = vadd.f32 %v742_v40, %v726_v43  ;;  %v955_v56 = vpop.f32.mrf.mxu0  ;;  %v979_v57 = vpop.f32.mrf.mxu1 }
  0xff   : > { %1065 = vtanh.f32 %v750_v46  ;;  %v719_v59 = vadd.f32 %v1249_v0, %v696_v47  ;;  %v727_v60 = vadd.f32 %v1249_v0, %v704_v48  ;;  %v956_v61 = vadd.f32 %v955_v56, %v954_v44  ;;  %v691_v46 = vpop.permute.xlu1 %690  ;;  %v739_v56 = vld [vmem:[%s1244_s14 + $0x38] sm:$0xff] }
 0x100   : > { %1067 = vtanh.f32 %v758_v49  ;;  %v980_v62 = vadd.f32 %v979_v57, %v978_v45  ;;  %v957_v63 = vpop.f32.mrf.mxu0  ;;  %v981_v1 = vpop.f32.mrf.mxu1  ;;  %v747_v57 = vld [vmem:[%s1244_s14 + $0x78] sm:$0xff] }
 0x101   : > { %v751_v2 = vadd.f32 %v735_v50, %v719_v59  ;;  %v759_v3 = vadd.f32 %v743_v51, %v727_v60  ;;  %v697_v4 = vmul.f32 %v956_v61, %v1232_v53  ;;  %v686_v33 = vpop.permute.xlu0 %685 }
 0x102   : > { %v705_v6 = vmul.f32 %v980_v62, %v676_v52  ;;  %v958_v7 = vpop.f32.mrf.mxu0  ;;  %v982_v8 = vpop.f32.mrf.mxu1 }
 0x103   : > { %1069 = vtanh.f32 %v751_v2  ;;  %v720_v10 = vadd.f32 %v1249_v0, %v697_v4  ;;  %v959_v12 = vadd.f32 %v958_v7, %v957_v63  ;;  %v983_v53 = vadd.f32 %v982_v8, %v981_v1 }
 0x104   : > { %v1058_v13 = vpop.eup %1057  ;;  %1071 = vtanh.f32 %v759_v3  ;;  %v728_v14 = vadd.f32 %v1249_v0, %v705_v6  ;;  %v960_v15 = vpop.f32.mrf.mxu0 }
 0x105   : > { %v984_v16 = vpop.f32.mrf.mxu1  ;;  %v1060_v17 = vpop.eup %1059  ;;  %780 = vst [vmem:[%s1273_s20] sm:$0xff] %v1058_v13  ;;  %v752_v18 = vadd.f32 %v736_v5, %v720_v10  ;;  %v698_v19 = vmul.f32 %v959_v12, %v1234_v54  ;;  %v706_v20 = vmul.f32 %v983_v53, %v681_v9 }
 0x106   : > { %788 = vst [vmem:[%s1273_s20 + $0x40] sm:$0xff] %v1060_v17  ;;  %v760_v21 = vadd.f32 %v744_v11, %v728_v14  ;;  %v961_v24 = vpop.f32.mrf.mxu0 }
 0x107   : > { %v985_v25 = vpop.f32.mrf.mxu1  ;;  %1073 = vtanh.f32 %v752_v18  ;;  %v721_v26 = vadd.f32 %v1249_v0, %v698_v19  ;;  %v729_v27 = vadd.f32 %v1249_v0, %v706_v20  ;;  %v962_v28 = vadd.f32 %v961_v24, %v960_v15 }
 0x108   : > { %v1062_v29 = vpop.eup %1061  ;;  %1075 = vtanh.f32 %v760_v21  ;;  %v986_v30 = vadd.f32 %v985_v25, %v984_v16  ;;  %v963_v54 = vpop.f32.mrf.mxu0 }
 0x109   : > { %v987_v31 = vpop.f32.mrf.mxu1  ;;  %v1064_v32 = vpop.eup %1063  ;;  %781 = vst [vmem:[%s1273_s20 + $0x8] sm:$0xff] %v1062_v29  ;;  %v753_v34 = vadd.f32 %v737_v22, %v721_v26  ;;  %v761_v35 = vadd.f32 %v745_v23, %v729_v27  ;;  %v699_v36 = vmul.f32 %v962_v28, %v1236_v55 }
 0x10a   : > { %789 = vst [vmem:[%s1273_s20 + $0x48] sm:$0xff] %v1064_v32  ;;  %v707_v38 = vmul.f32 %v986_v30, %v686_v33  ;;  %v964_v39 = vpop.f32.mrf.mxu0 }
 0x10b   : > { %v988_v40 = vpop.f32.mrf.mxu1  ;;  %1077 = vtanh.f32 %v753_v34  ;;  %v722_v41 = vadd.f32 %v1249_v0, %v699_v36  ;;  %v965_v43 = vadd.f32 %v964_v39, %v963_v54 }
 0x10c   : > { %v989_v44 = vadd.f32 %v988_v40, %v987_v31  ;;  %v1066_v45 = vpop.eup %1065  ;;  %1079 = vtanh.f32 %v761_v35  ;;  %v730_v55 = vadd.f32 %v1249_v0, %v707_v38 }
 0x10d   : > { %v1068_v47 = vpop.eup %1067  ;;  %782 = vst [vmem:[%s1273_s20 + $0x10] sm:$0xff] %v1066_v45  ;;  %v754_v48 = vadd.f32 %v738_v37, %v722_v41  ;;  %v700_v49 = vmul.f32 %v965_v43, %v1238_v58 }
 0x10e   : > { %v708_v50 = vmul.f32 %v989_v44, %v691_v46  ;;  %790 = vst [vmem:[%s1273_s20 + $0x50] sm:$0xff] %v1068_v47  ;;  %v762_v51 = vadd.f32 %v746_v42, %v730_v55 }
 0x10f   : > { %1081 = vtanh.f32 %v754_v48  ;;  %v723_v59 = vadd.f32 %v1249_v0, %v700_v49 }
 0x110   : > { %v731_v60 = vadd.f32 %v1249_v0, %v708_v50  ;;  %v1070_v61 = vpop.eup %1069  ;;  %1083 = vtanh.f32 %v762_v51 }
 0x111   : > { %v1072_v62 = vpop.eup %1071  ;;  %783 = vst [vmem:[%s1273_s20 + $0x18] sm:$0xff] %v1070_v61  ;;  %v755_v58 = vadd.f32 %v739_v56, %v723_v59 }
 0x112   : > { %v763_v63 = vadd.f32 %v747_v57, %v731_v60  ;;  %791 = vst [vmem:[%s1273_s20 + $0x58] sm:$0xff] %v1072_v62 }
 0x113   : > { %1085 = vtanh.f32 %v755_v58 }
 0x114   : > { %v1074_v1 = vpop.eup %1073  ;;  %1087 = vtanh.f32 %v763_v63 }
 0x115   : > { %v1076_v52 = vpop.eup %1075  ;;  %784 = vst [vmem:[%s1273_s20 + $0x20] sm:$0xff] %v1074_v1 }
 0x116   : > { %792 = vst [vmem:[%s1273_s20 + $0x60] sm:$0xff] %v1076_v52 }
 0x118   : > { %v1078_v0 = vpop.eup %1077 }
 0x119   : > { %v1080_v2 = vpop.eup %1079  ;;  %785 = vst [vmem:[%s1273_s20 + $0x28] sm:$0xff] %v1078_v0 }
 0x11a   : > { %793 = vst [vmem:[%s1273_s20 + $0x68] sm:$0xff] %v1080_v2 }
 0x11c   : > { %v1082_v3 = vpop.eup %1081 }
 0x11d   : > { %v1084_v4 = vpop.eup %1083  ;;  %786 = vst [vmem:[%s1273_s20 + $0x30] sm:$0xff] %v1082_v3 }
 0x11e   : > { %794 = vst [vmem:[%s1273_s20 + $0x70] sm:$0xff] %v1084_v4 }
 0x120   : > { %v1086_v5 = vpop.eup %1085 }
 0x121   : > { %v1088_v6 = vpop.eup %1087  ;;  %787 = vst [vmem:[%s1273_s20 + $0x38] sm:$0xff] %v1086_v5 }
 0x122   : > { %795 = vst [vmem:[%s1273_s20 + $0x78] sm:$0xff] %v1088_v6 }
 0x123 PF: > { %s15_s18 = sadd.s32 1, %s1095_s18  }
 0x124   : > { %p12_p4 = scmp.ge.s32.totalorder %s15_s18, 4  }
 0x126   :  { %14 = sbr.rel (!%p12_p4) target bundleno = 1 (0x1), region = 76 }

</bundles_post_ra>
